<compile_context>
chip_gen: v7x
topology: tpu7x:2x2x1
jax: 0.10.0
libtpu: 0.0.40
codegen_flags: <defaults>
</compile_context>

<pallas_src>
import jax
import jax.numpy as jnp
from jax.experimental import pallas as pl
from jax.experimental.pallas import tpu as pltpu

INPUT_SIZE = 7
HIDDEN_SIZE = 32
HIDDEN_SIZE2 = 64
OUTPUT_SIZE = 2


def _round_up(n, m):
    return ((n + m - 1) // m) * m


def mlp_kernel(x_ref, w1_ref, b1_ref, w2_ref, b2_ref, w3_ref, b3_ref, o_ref):
    # x_ref: (INPUT_SIZE, TB) — batch on lanes. Weights in compute dtype (bf16/f32),
    # biases in f32, all matmul accumulation in f32.
    cdt = w1_ref.dtype

    def sigmoid_fast(z):
        # sigmoid(z) == 0.5*tanh(0.5*z)+0.5 : one EUP transcendental per element.
        return 0.5 * jnp.tanh(0.5 * z) + 0.5

    x = x_ref[...].astype(cdt)

    # fc1 + sigmoid:  (32,7) @ (7,TB) -> (32,TB)
    z1 = jnp.dot(w1_ref[...], x, preferred_element_type=jnp.float32) + b1_ref[...]
    h1 = sigmoid_fast(z1.astype(cdt))              # activation kept in compute dtype

    # fc2 + sigmoid:  (64,32) @ (32,TB) -> (64,TB)
    z2 = jnp.dot(w2_ref[...], h1, preferred_element_type=jnp.float32) + b2_ref[...]
    h2 = sigmoid_fast(z2.astype(cdt))

    # fc3:            (2,64) @ (64,TB) -> (2,TB), f32 logits
    logits = jnp.dot(w3_ref[...], h2, preferred_element_type=jnp.float32) + b3_ref[...]

    # log_softmax over the 2 classes (sublane rows) — explicit 2-element form,
    # pure VPU + EUP, no cross-lane/sublane reduction.
    l0 = logits[0:1, :]
    l1 = logits[1:2, :]
    m = jnp.maximum(l0, l1)
    lse = m + jnp.log1p(jnp.exp(-jnp.abs(l0 - l1)))          # (1, TB)
    o_ref[...] = logits - lse                                 # broadcast over 2 rows


def net_forward(x, w1, b1, w2, b2, w3, b3, *, block_batch=4096,
                compute_dtype=jnp.bfloat16):
    """x: [B, 7]; weights in PyTorch layout: w:[out,in], b:[out]. Returns [B, 2] f32."""
    B = x.shape[0]

    # Batch tile: multiple of 128 lanes, capped so the grid keeps >= 2 steps when
    # possible (v7x megacore), and capped at block_batch.
    tb = min(block_batch, max(128, _round_up(pl.cdiv(B, 2), 128)))
    grid = (pl.cdiv(B, tb),)

    # TODO(synk): if the caller can supply x feature-major [7, B], drop this
    # transpose (one full HBM pass over x) — biggest relative win on v5e.
    xT = x.T                                                  # (7, B)

    w1c = w1.astype(compute_dtype)
    w2c = w2.astype(compute_dtype)
    w3c = w3.astype(compute_dtype)
    b1c = b1.astype(jnp.float32).reshape(HIDDEN_SIZE, 1)
    b2c = b2.astype(jnp.float32).reshape(HIDDEN_SIZE2, 1)
    b3c = b3.astype(jnp.float32).reshape(OUTPUT_SIZE, 1)

    flops = 2 * (INPUT_SIZE * HIDDEN_SIZE
                 + HIDDEN_SIZE * HIDDEN_SIZE2
                 + HIDDEN_SIZE2 * OUTPUT_SIZE) * B            # ~4800*B
    transcendentals = (HIDDEN_SIZE + HIDDEN_SIZE2 + 2) * B    # tanh x96 + exp/log
    param_bytes = (w1c.size + w2c.size + w3c.size) * w1c.dtype.itemsize \
        + (b1c.size + b2c.size + b3c.size) * 4
    bytes_accessed = (INPUT_SIZE + OUTPUT_SIZE) * 4 * B + param_bytes

    out_t = pl.pallas_call(
        mlp_kernel,
        out_shape=jax.ShapeDtypeStruct((OUTPUT_SIZE, B), jnp.float32),
        grid=grid,
        in_specs=[
            # activations: tiled over batch (lane axis), double-buffered by Pallas;
            # ragged edge tile is handled by implicit masking (no wrapper-side pad).
            pl.BlockSpec((INPUT_SIZE, tb), lambda i: (0, i)),
            # weights & biases: full-array blocks, constant index_map -> VMEM-resident.
            pl.BlockSpec((HIDDEN_SIZE, INPUT_SIZE), lambda i: (0, 0)),
            pl.BlockSpec((HIDDEN_SIZE, 1), lambda i: (0, 0)),
            pl.BlockSpec((HIDDEN_SIZE2, HIDDEN_SIZE), lambda i: (0, 0)),
            pl.BlockSpec((HIDDEN_SIZE2, 1), lambda i: (0, 0)),
            pl.BlockSpec((OUTPUT_SIZE, HIDDEN_SIZE2), lambda i: (0, 0)),
            pl.BlockSpec((OUTPUT_SIZE, 1), lambda i: (0, 0)),
        ],
        out_specs=pl.BlockSpec((OUTPUT_SIZE, tb), lambda i: (0, i)),
        compiler_params=pltpu.CompilerParams(
            dimension_semantics=("parallel",),   # v7x: shard batch tiles across 2 TCs
        ),
        cost_estimate=pl.CostEstimate(
            flops=flops,
            transcendentals=transcendentals,
            bytes_accessed=bytes_accessed,
        ),
    )(xT, w1c, b1c, w2c, b2c, w3c, b3c)

    # Keep the module's [B, 2] contract; downstream consumers that accept [2, B]
    # can use out_t directly and skip this transpose.
    return out_t.T


def init_params(key):
    """Deterministic init mimicking torch.nn.Linear (uniform +/- 1/sqrt(fan_in)),
    stored in PyTorch layout: w [out, in], b [out]."""
    def linear(k, fan_in, fan_out):
        kw, kb = jax.random.split(k)
        bound = 1.0 / jnp.sqrt(fan_in)
        w = jax.random.uniform(kw, (fan_out, fan_in), jnp.float32, -bound, bound)
        b = jax.random.uniform(kb, (fan_out,), jnp.float32, -bound, bound)
        return w, b

    k1, k2, k3 = jax.random.split(key, 3)
    w1, b1 = linear(k1, INPUT_SIZE, HIDDEN_SIZE)
    w2, b2 = linear(k2, HIDDEN_SIZE, HIDDEN_SIZE2)
    w3, b3 = linear(k3, HIDDEN_SIZE2, OUTPUT_SIZE)
    return w1, b1, w2, b2, w3, b3


def reference_forward(x, w1, b1, w2, b2, w3, b3):
    h1 = jax.nn.sigmoid(x @ w1.T + b1)
    h2 = jax.nn.sigmoid(h1 @ w2.T + b2)
    logits = h2 @ w3.T + b3
    return jax.nn.log_softmax(logits, axis=-1)


if __name__ == "__main__":
    key = jax.random.PRNGKey(0)
    kx, kp, kx2 = jax.random.split(key, 3)

    params = init_params(kp)

    # Small batch, exact f32 path: tight check against the reference.
    batch = 8
    x = jax.random.normal(kx, (batch, INPUT_SIZE), jnp.float32)
    ref = reference_forward(x, *params)

    out_f32 = jax.block_until_ready(
        net_forward(x, *params, compute_dtype=jnp.float32))
    assert out_f32.shape == (batch, OUTPUT_SIZE)
    assert jnp.allclose(out_f32, ref, atol=1e-5, rtol=1e-5)

    # Default bf16 fast path: looser tolerance (bf16 matmul inputs / activations).
    out_bf16 = jax.block_until_ready(net_forward(x, *params))
    assert out_bf16.shape == (batch, OUTPUT_SIZE)
    assert jnp.allclose(out_bf16, ref, atol=5e-2, rtol=5e-2)

    # Multi-tile grid with a ragged edge block (exercises implicit masking and
    # the >=2-step grid used for v7x megacore sharding).
    batch2 = 300
    x2 = jax.random.normal(kx2, (batch2, INPUT_SIZE), jnp.float32)
    ref2 = reference_forward(x2, *params)
    out2 = jax.block_until_ready(net_forward(x2, *params))
    assert out2.shape == (batch2, OUTPUT_SIZE)
    assert bool(jnp.all(jnp.isfinite(out2)))
    assert jnp.allclose(out2, ref2, atol=5e-2, rtol=5e-2)

    print("KERNEL_OK")
</pallas_src>

<mosaic_0001>
module attributes {stable_mosaic.version = 11 : i64} {
  func.func @mlp_kernel(%arg0: i32, %arg1: memref<7x128xf32, #tpu.memory_space<vmem>>, %arg2: memref<32x7xf32, #tpu.memory_space<vmem>>, %arg3: memref<32x1xf32, #tpu.memory_space<vmem>>, %arg4: memref<64x32xf32, #tpu.memory_space<vmem>>, %arg5: memref<64x1xf32, #tpu.memory_space<vmem>>, %arg6: memref<2x64xf32, #tpu.memory_space<vmem>>, %arg7: memref<2x1xf32, #tpu.memory_space<vmem>>, %arg8: memref<2x128xf32, #tpu.memory_space<vmem>>) attributes {dimension_semantics = [#tpu.dimension_semantics<parallel>], iteration_bounds = array<i64: 1>, scalar_prefetch = 0 : i64, scratch_operands = 0 : i64, tpu.core_type = #tpu.core_type<tc>, window_params = [{transform_indices = @transform_0, window_bounds = array<i64: 7, 128>}, {pipeline_mode = #tpu.pipeline_mode<synchronous>, transform_indices = @transform_1, window_bounds = array<i64: 32, 7>}, {pipeline_mode = #tpu.pipeline_mode<synchronous>, transform_indices = @transform_2, window_bounds = array<i64: 32, 1>}, {pipeline_mode = #tpu.pipeline_mode<synchronous>, transform_indices = @transform_3, window_bounds = array<i64: 64, 32>}, {pipeline_mode = #tpu.pipeline_mode<synchronous>, transform_indices = @transform_4, window_bounds = array<i64: 64, 1>}, {pipeline_mode = #tpu.pipeline_mode<synchronous>, transform_indices = @transform_5, window_bounds = array<i64: 2, 64>}, {pipeline_mode = #tpu.pipeline_mode<synchronous>, transform_indices = @transform_6, window_bounds = array<i64: 2, 1>}, {transform_indices = @transform_7, window_bounds = array<i64: 2, 128>}]} {
    %c0 = arith.constant 0 : index
    %c0_0 = arith.constant 0 : index
    %0 = vector.load %arg1[%c0, %c0_0] : memref<7x128xf32, #tpu.memory_space<vmem>>, vector<7x128xf32>
    %c0_1 = arith.constant 0 : index
    %c0_2 = arith.constant 0 : index
    %1 = vector.load %arg2[%c0_1, %c0_2] : memref<32x7xf32, #tpu.memory_space<vmem>>, vector<32x7xf32>
    %cst = arith.constant dense<0.000000e+00> : vector<32x128xf32>
    %2 = tpu.matmul %1, %0, %cst {dimension_numbers = #tpu.dot_dimension_numbers<[1], [0], [0], [1], [0, 0, 1, 1], [], []>} : vector<32x7xf32>, vector<7x128xf32>, vector<32x128xf32> -> vector<32x128xf32>
    %c0_3 = arith.constant 0 : index
    %c0_4 = arith.constant 0 : index
    %3 = vector.load %arg3[%c0_3, %c0_4] : memref<32x1xf32, #tpu.memory_space<vmem>>, vector<32x1xf32>
    %4 = vector.broadcast %3 : vector<32x1xf32> to vector<32x128xf32>
    %5 = arith.addf %2, %4 : vector<32x128xf32>
    %cst_5 = arith.constant 5.000000e-01 : f32
    %6 = vector.broadcast %cst_5 : f32 to vector<32x128xf32>
    %7 = arith.mulf %6, %5 : vector<32x128xf32>
    %8 = math.tanh %7 : vector<32x128xf32>
    %cst_6 = arith.constant 5.000000e-01 : f32
    %9 = vector.broadcast %cst_6 : f32 to vector<32x128xf32>
    %10 = arith.mulf %9, %8 : vector<32x128xf32>
    %cst_7 = arith.constant 5.000000e-01 : f32
    %11 = vector.broadcast %cst_7 : f32 to vector<32x128xf32>
    %12 = arith.addf %10, %11 : vector<32x128xf32>
    %c0_8 = arith.constant 0 : index
    %c0_9 = arith.constant 0 : index
    %13 = vector.load %arg4[%c0_8, %c0_9] : memref<64x32xf32, #tpu.memory_space<vmem>>, vector<64x32xf32>
    %cst_10 = arith.constant dense<0.000000e+00> : vector<64x128xf32>
    %14 = tpu.matmul %13, %12, %cst_10 {dimension_numbers = #tpu.dot_dimension_numbers<[1], [0], [0], [1], [0, 0, 1, 1], [], []>} : vector<64x32xf32>, vector<32x128xf32>, vector<64x128xf32> -> vector<64x128xf32>
    %c0_11 = arith.constant 0 : index
    %c0_12 = arith.constant 0 : index
    %15 = vector.load %arg5[%c0_11, %c0_12] : memref<64x1xf32, #tpu.memory_space<vmem>>, vector<64x1xf32>
    %16 = vector.broadcast %15 : vector<64x1xf32> to vector<64x128xf32>
    %17 = arith.addf %14, %16 : vector<64x128xf32>
    %cst_13 = arith.constant 5.000000e-01 : f32
    %18 = vector.broadcast %cst_13 : f32 to vector<64x128xf32>
    %19 = arith.mulf %18, %17 : vector<64x128xf32>
    %20 = math.tanh %19 : vector<64x128xf32>
    %cst_14 = arith.constant 5.000000e-01 : f32
    %21 = vector.broadcast %cst_14 : f32 to vector<64x128xf32>
    %22 = arith.mulf %21, %20 : vector<64x128xf32>
    %cst_15 = arith.constant 5.000000e-01 : f32
    %23 = vector.broadcast %cst_15 : f32 to vector<64x128xf32>
    %24 = arith.addf %22, %23 : vector<64x128xf32>
    %c0_16 = arith.constant 0 : index
    %c0_17 = arith.constant 0 : index
    %25 = vector.load %arg6[%c0_16, %c0_17] : memref<2x64xf32, #tpu.memory_space<vmem>>, vector<2x64xf32>
    %cst_18 = arith.constant dense<0.000000e+00> : vector<2x128xf32>
    %26 = tpu.matmul %25, %24, %cst_18 {dimension_numbers = #tpu.dot_dimension_numbers<[1], [0], [0], [1], [0, 0, 1, 1], [], []>} : vector<2x64xf32>, vector<64x128xf32>, vector<2x128xf32> -> vector<2x128xf32>
    %c0_19 = arith.constant 0 : index
    %c0_20 = arith.constant 0 : index
    %27 = vector.load %arg7[%c0_19, %c0_20] : memref<2x1xf32, #tpu.memory_space<vmem>>, vector<2x1xf32>
    %28 = vector.broadcast %27 : vector<2x1xf32> to vector<2x128xf32>
    %29 = arith.addf %26, %28 : vector<2x128xf32>
    %30 = vector.extract_strided_slice %29 {offsets = [0, 0], sizes = [1, 128], strides = [1, 1]} : vector<2x128xf32> to vector<1x128xf32>
    %31 = vector.extract_strided_slice %29 {offsets = [1, 0], sizes = [1, 128], strides = [1, 1]} : vector<2x128xf32> to vector<1x128xf32>
    %32 = arith.maximumf %30, %31 : vector<1x128xf32>
    %33 = arith.subf %30, %31 : vector<1x128xf32>
    %34 = math.absf %33 : vector<1x128xf32>
    %cst_21 = arith.constant 0.000000e+00 : f32
    %35 = vector.broadcast %cst_21 : f32 to vector<1x128xf32>
    %36 = arith.subf %35, %34 : vector<1x128xf32>
    %37 = math.exp %36 : vector<1x128xf32>
    %38 = math.log1p %37 : vector<1x128xf32>
    %39 = arith.addf %32, %38 : vector<1x128xf32>
    %40 = vector.broadcast %39 : vector<1x128xf32> to vector<2x128xf32>
    %41 = arith.subf %29, %40 : vector<2x128xf32>
    %c0_22 = arith.constant 0 : index
    %c0_23 = arith.constant 0 : index
    %42 = vector.load %arg8[%c0_22, %c0_23] : memref<2x128xf32, #tpu.memory_space<vmem>>, vector<2x128xf32>
    tpu.vector_store %arg8[%c0_22, %c0_23], %41 {strides = array<i32>} : memref<2x128xf32, #tpu.memory_space<vmem>>, vector<2x128xf32>,
    return
  }
  func.func @transform_0(%arg0: i32) -> (i32, i32) {
    %c0_i32 = arith.constant 0 : i32
    %c0_i32_0 = arith.constant 0 : i32
    return %c0_i32, %arg0 : i32, i32
  }
  func.func @transform_1(%arg0: i32) -> (i32, i32) {
    %c0_i32 = arith.constant 0 : i32
    %c0_i32_0 = arith.constant 0 : i32
    %c0_i32_1 = arith.constant 0 : i32
    return %c0_i32, %c0_i32_0 : i32, i32
  }
  func.func @transform_2(%arg0: i32) -> (i32, i32) {
    %c0_i32 = arith.constant 0 : i32
    %c0_i32_0 = arith.constant 0 : i32
    %c0_i32_1 = arith.constant 0 : i32
    return %c0_i32, %c0_i32_0 : i32, i32
  }
  func.func @transform_3(%arg0: i32) -> (i32, i32) {
    %c0_i32 = arith.constant 0 : i32
    %c0_i32_0 = arith.constant 0 : i32
    %c0_i32_1 = arith.constant 0 : i32
    return %c0_i32, %c0_i32_0 : i32, i32
  }
  func.func @transform_4(%arg0: i32) -> (i32, i32) {
    %c0_i32 = arith.constant 0 : i32
    %c0_i32_0 = arith.constant 0 : i32
    %c0_i32_1 = arith.constant 0 : i32
    return %c0_i32, %c0_i32_0 : i32, i32
  }
  func.func @transform_5(%arg0: i32) -> (i32, i32) {
    %c0_i32 = arith.constant 0 : i32
    %c0_i32_0 = arith.constant 0 : i32
    %c0_i32_1 = arith.constant 0 : i32
    return %c0_i32, %c0_i32_0 : i32, i32
  }
  func.func @transform_6(%arg0: i32) -> (i32, i32) {
    %c0_i32 = arith.constant 0 : i32
    %c0_i32_0 = arith.constant 0 : i32
    %c0_i32_1 = arith.constant 0 : i32
    return %c0_i32, %c0_i32_0 : i32, i32
  }
  func.func @transform_7(%arg0: i32) -> (i32, i32) {
    %c0_i32 = arith.constant 0 : i32
    %c0_i32_0 = arith.constant 0 : i32
    return %c0_i32, %arg0 : i32, i32
  }
}

</mosaic_0001>

<bundles_post_ra>
// kernel: tpu_custom_call.1
= control target key start
LH: loop header
LB: loop body
LE: loop exit
PB: predicated region body
PF: predicated region fallthrough
CT: control target
= control target key end

     0   :  { %vm69_vm0 = vcmask 1046528   ;;  %vm56_vm1 = vcmask 56320   ;;  %v678_v5 = vmov 0   ;;  %s832_s0 = inlined_call_operand.vmem [shape: f32[7,8], index: 0, kind: input, shape index: {}]   ;;  %s833_s1 = inlined_call_operand.vmem [shape: f32[32,7], index: 1, kind: input, shape index: {}]   ;;  %s834_s2 = inlined_call_operand.vmem [shape: f32[32,1], index: 2, kind: input, shape index: {}]   ;;  %s835_s3 = inlined_call_operand.vmem [shape: f32[64,32], index: 3, kind: input, shape index: {}]   ;;  %s836_s4 = inlined_call_operand.vmem [shape: f32[64,1], index: 4, kind: input, shape index: {}]   ;;  %s837_s5 = inlined_call_operand.vmem [shape: f32[2,64], index: 5, kind: input, shape index: {}]   ;;  %s838_s6 = inlined_call_operand.vmem [shape: f32[2,1], index: 6, kind: input, shape index: {}]   ;;  %s839_s7 = inlined_call_operand.hbm [shape: f32[2,8], index: 7, kind: output, shape index: {}]  }
   0x1   :  { %v27_v0 = vld [vmem:[%s832_s0] sm:$0x7f]  ;;  %v29_v2 = vld [vmem:[%s833_s1 + $0x8] sm:$0xff]  ;;  %v30_v3 = vld [vmem:[%s833_s1 + $0x10] sm:$0xff]  ;;  %624 = vset.pattern.permute.xlu0 %v678_v5  ;;  %625 = vset.pattern.permute.xlu1 %v678_v5 }
   0x2   :  { %v28_v1 = vld [vmem:[%s833_s1] sm:$0xff]  ;;  %552 = vmatprep.subr.msk.mxu0 %vm69_vm0, %v27_v0  ;;  %v34_v6 = vld [vmem:[%s834_s2 + $0x10] sm:$0xff]  ;;  %v31_v7 = vld [vmem:[%s833_s1 + $0x18] sm:$0xff] }
   0x3   :  { %554 = vmatprep.mubr.msk.f32.mxu0 %vm56_vm1, %v28_v1  ;;  %v32_v4 = vld [vmem:[%s834_s2] sm:$0xff]  ;;  %553 = vmatpush3.msk.msra.mxu0 %vm69_vm0, %v27_v0  ;;  %v33_v8 = vld [vmem:[%s834_s2 + $0x8] sm:$0xff]  ;;  %v35_v9 = vld [vmem:[%s834_s2 + $0x18] sm:$0xff] }
   0x4   :  { %555 = vmatmul.mubr.msk.f32.vlgmr.msra.gmra.mrb[0].mxu0 %vm56_vm1, %v29_v2  ;;  %38 = vperm.xlu0 %624, %v32_v4  }
   0x5   :  { %557 = vmatprep.mubr.msk.f32.mxu0 %vm56_vm1, %v30_v3  ;;  %48 = vperm.xlu1 %625, %v34_v6  }
   0x6   :  { %12 = vsyncpa [#allocation3], 0  ;;  %v182_v10 = vld [vmem:[%s836_s4] sm:$0xff]  ;;  %v183_v11 = vld [vmem:[%s836_s4 + $0x8] sm:$0xff]  ;;  %vm230_vm2 = vcmask 261120   ;;  %v679_v57 = vmov 0.0|0.0  }
   0x7   :  { %v184_v12 = vld [vmem:[%s836_s4 + $0x10] sm:$0xff]  ;;  %v185_v13 = vld [vmem:[%s836_s4 + $0x18] sm:$0xff]  ;;  %v186_v14 = vld [vmem:[%s836_s4 + $0x20] sm:$0xff]  ;;  %607 = vmatprep.subr.bf16.mxu0 %v679_v57  ;;  %vm680_vm3 = vmmov 0   ;;  %v681_v58 = vmov 0.0   ;;  %vm399_vm4 = vcmask 523264  }
   0x8   :  { %558 = vmatmul.mubr.msk.f32.gmra.mrb[2].mxu0 %vm56_vm1, %v31_v7  ;;  %43 = vperm.xlu0 %624, %v33_v8   ;;  %v187_v15 = vld [vmem:[%s836_s4 + $0x28] sm:$0xff]  ;;  %v188_v16 = vld [vmem:[%s836_s4 + $0x30] sm:$0xff]  ;;  %v189_v17 = vld [vmem:[%s836_s4 + $0x38] sm:$0xff] }
   0x9   :  { %53 = vperm.xlu1 %625, %v35_v9   ;;  %v393_v18 = vld [vmem:[%s838_s6] sm:$0x3]  ;;  %v175_v50 = vld [vmem:[%s835_s3 + $0x8] sm:$0xff]  ;;  %v176_v51 = vld [vmem:[%s835_s3 + $0x10] sm:$0xff]  ;;  %596 = vmatprep.mubr.msk.f32.mxu0 %vm680_vm3, %v681_v58 }
   0xa   :  { %v174_v19 = vld [vmem:[%s835_s3] sm:$0xff]  ;;  %v177_v52 = vld [vmem:[%s835_s3 + $0x18] sm:$0xff]  ;;  %v179_v54 = vld [vmem:[%s835_s3 + $0x28] sm:$0xff] }
   0xb   :  { %568 = vmatprep.mubr.msk.f32.mxu1 %vm230_vm2, %v174_v19  ;;  %v178_v53 = vld [vmem:[%s835_s3 + $0x20] sm:$0xff]  ;;  %v180_v55 = vld [vmem:[%s835_s3 + $0x30] sm:$0xff]  ;;  %v181_v56 = vld [vmem:[%s835_s3 + $0x38] sm:$0xff] }
   0xc   :  { %192 = vperm.xlu0 %624, %v182_v10  }
   0xd   :  { %197 = vperm.xlu1 %625, %v183_v11  }
  0x10   :  { %202 = vperm.xlu0 %624, %v184_v12  }
  0x11   :  { %207 = vperm.xlu1 %625, %v185_v13  }
  0x14   :  { %212 = vperm.xlu0 %624, %v186_v14  }
  0x15   :  { %217 = vperm.xlu1 %625, %v187_v15  }
  0x18   :  { %222 = vperm.xlu0 %624, %v188_v16  }
  0x19   :  { %227 = vperm.xlu1 %625, %v189_v17  }
  0x1c   :  { %396 = vperm.xlu0 %624, %v393_v18  }
  0x83   :  { %v39_v20 = vpop.permute.xlu0 %38 }
  0x84   :  { %v49_v21 = vpop.permute.xlu1 %48 }
  0x87   :  { %v44_v22 = vpop.permute.xlu0 %43 }
  0x88   :  { %v54_v28 = vpop.permute.xlu1 %53 }
  0x8b   :  { %v193_v60 = vpop.permute.xlu0 %192 }
  0x8c   :  { %v198_v59 = vpop.permute.xlu1 %197 }
  0x8f   :  { %v203_v63 = vpop.permute.xlu0 %202 }
  0x90   :  { %v208_v61 = vpop.permute.xlu1 %207 }
  0x93   :  { %v213_v10 = vpop.permute.xlu0 %212 }
  0x94   :  { %v218_v8 = vpop.permute.xlu1 %217 }
  0x98   :  { %v228_v18 = vpop.permute.xlu1 %227 }
  0xd7   :  { %v556_v23 = vpop.f32.mrb[0].mxu0 }
  0xd8   :  { %v145_v24 = vadd.f32 %v556_v23, %v44_v22  ;;  %v139_v25 = vpop.f32.mrb[1].mxu0 }
  0xd9   :  { %v140_v26 = vadd.f32 %v139_v25, %v39_v20 }
  0xda   :  { %v159_v27 = vmul.f32 0.5, %v145_v24 }
  0xdb   :  { %v158_v29 = vmul.f32 0.5, %v140_v26  ;;  %v559_v30 = vpop.f32.mrb[2].mxu0 }
  0xdc   :  { %626 = vtanh.f32 %v159_v27  ;;  %v155_v31 = vadd.f32 %v559_v30, %v54_v28  ;;  %v149_v32 = vpop.f32.mrb[3].mxu0 }
  0xdd   :  { %628 = vtanh.f32 %v158_v29  ;;  %v150_v33 = vadd.f32 %v149_v32, %v49_v21  ;;  %v223_v21 = vpop.permute.xlu0 %222 }
  0xde   :  { %v161_v34 = vmul.f32 0.5, %v155_v31 }
  0xdf   :  { %v160_v35 = vmul.f32 0.5, %v150_v33 }
  0xe0   :  { %630 = vtanh.f32 %v161_v34 }
  0xe1   :  { %632 = vtanh.f32 %v160_v35 }
  0xe6   :  { %v627_v36 = vpop.eup %626 }
  0xe7   :  { %v629_v37 = vpop.eup %628  ;;  %v167_v38 = vmul.f32 0.5, %v627_v36 }
  0xe8   :  { %v166_v39 = vmul.f32 0.5, %v629_v37 }
  0xe9   :  { %v171_v40 = vadd.f32 0.5, %v167_v38 }
  0xea   :  { %v631_v41 = vpop.eup %630  ;;  %v170_v42 = vadd.f32 0.5, %v166_v39 }
  0xeb   :  { %v633_v43 = vpop.eup %632  ;;  %v169_v44 = vmul.f32 0.5, %v631_v41 }
  0xec   :  { %v168_v45 = vmul.f32 0.5, %v633_v43  ;;  %v599_v46 = vpack.c.bf16 %v171_v40, %v170_v42 }
  0xed   :  { %v173_v47 = vadd.f32 0.5, %v169_v44 }
  0xee   :  { %v172_v48 = vadd.f32 0.5, %v168_v45  ;;  %600 = vmatprep.subr.bf16.mxu1 %v599_v46 }
  0xef   :  { %602 = vmatpush3.bf16.msra.mxu1 %v599_v46 }
  0xf0   :  { %v603_v49 = vpack.c.bf16 %v173_v47, %v172_v48 }
  0xf2   :  { %604 = vmatprep.subr.bf16.mxu1 %v603_v49 }
  0xf3   :  { %606 = vmatpush3.bf16.msra.mxu1 %v603_v49 }
  0xf6   :  { %569 = vmatmul.mubr.msk.f32.vlgmr.msra.gmra.mrb[0].mxu1 %vm230_vm2, %v175_v50 }
  0xf7   :  { %571 = vmatprep.mubr.msk.f32.mxu1 %vm230_vm2, %v176_v51 }
  0xfa   :  { %572 = vmatmul.mubr.msk.f32.gmra.mrb[2].mxu1 %vm230_vm2, %v177_v52 }
  0xfb   :  { %574 = vmatprep.mubr.msk.f32.mxu1 %vm230_vm2, %v178_v53 }
  0xfe   :  { %575 = vmatmul.mubr.msk.f32.gmra.mrb[4].mxu1 %vm230_vm2, %v179_v54 }
  0xff   :  { %577 = vmatprep.mubr.msk.f32.mxu1 %vm230_vm2, %v180_v55  ;;  %v392_v55 = vld [vmem:[%s837_s5] sm:$0x3]  ;;  %s682_s5 = smov [#allocation2]  }
 0x100   :  { %s504_s23 = sshll.u32 %s682_s5, 4  ;;  %s505_s23 = int_to_ptr.vmem [resolvable:$true] %s504_s23 }
 0x101   :  { %s654_s24 = scalar_lea.vmem %s505_s23, 32  ;;  %p659_p1 = scmp.lt.s32.totalorder %s505_s23, %s505_s23 }
 0x102   :  { %578 = vmatmul.mubr.msk.f32.gmra.mrb[6].mxu1 %vm230_vm2, %v181_v56  ;;  %v397_v56 = vpop.permute.xlu0 %396  ;;  %p655_p0 = scmp.ne.s32.totalorder %s505_s23, %s654_s24  ;;  %p660_p2 = scmp.lt.s32.totalorder %s654_s24, %s654_s24 }
 0x104   :  { %p661_p3 = por %p660_p2, %p659_p1 }
 0x106   :  { %p662_p4 = pnand %p661_p3, %p655_p0 }
 0x1c9   :  { %v570_v62 = vpop.f32.mrb[0].mxu1 }
 0x1ca   :  { %v327_v0 = vadd.f32 %v570_v62, %v198_v59  ;;  %v321_v1 = vpop.f32.mrb[1].mxu1 }
 0x1cb   :  { %v322_v2 = vadd.f32 %v321_v1, %v193_v60 }
 0x1cc   :  { %v361_v3 = vmul.f32 0.5, %v327_v0 }
 0x1cd   :  { %v360_v4 = vmul.f32 0.5, %v322_v2  ;;  %v573_v5 = vpop.f32.mrb[2].mxu1 }
 0x1ce   :  { %634 = vtanh.f32 %v361_v3  ;;  %v337_v6 = vadd.f32 %v573_v5, %v208_v61  ;;  %v331_v7 = vpop.f32.mrb[3].mxu1 }
 0x1cf   :  { %636 = vtanh.f32 %v360_v4  ;;  %v332_v9 = vadd.f32 %v331_v7, %v203_v63  ;;  %v492_v4 = vlaneseq }
 0x1d0   :  { %v363_v11 = vmul.f32 0.5, %v337_v6 }
 0x1d1   :  { %v362_v12 = vmul.f32 0.5, %v332_v9  ;;  %v576_v13 = vpop.f32.mrb[4].mxu1  ;;  %v493_v7 = vshrl.u32 %v492_v4, 7 }
 0x1d2   :  { %638 = vtanh.f32 %v363_v11  ;;  %v347_v14 = vadd.f32 %v576_v13, %v218_v8  ;;  %v341_v15 = vpop.f32.mrb[5].mxu1 }
 0x1d3   :  { %640 = vtanh.f32 %v362_v12  ;;  %v342_v16 = vadd.f32 %v341_v15, %v213_v10  ;;  %v494_v12 = vsub.s32 0, %v493_v7 }
 0x1d4   :  { %v365_v17 = vmul.f32 0.5, %v347_v14 }
 0x1d5   :  { %v364_v19 = vmul.f32 0.5, %v342_v16  ;;  %v579_v20 = vpop.f32.mrb[6].mxu1 }
 0x1d6   :  { %642 = vtanh.f32 %v365_v17  ;;  %v357_v22 = vadd.f32 %v579_v20, %v228_v18  ;;  %v351_v23 = vpop.f32.mrb[7].mxu1 }
 0x1d7   :  { %644 = vtanh.f32 %v364_v19  ;;  %v352_v24 = vadd.f32 %v351_v23, %v223_v21 }
 0x1d8   :  { %v635_v25 = vpop.eup %634  ;;  %v367_v26 = vmul.f32 0.5, %v357_v22 }
 0x1d9   :  { %v637_v27 = vpop.eup %636  ;;  %v377_v28 = vmul.f32 0.5, %v635_v25  ;;  %v366_v29 = vmul.f32 0.5, %v352_v24 }
 0x1da   :  { %v376_v30 = vmul.f32 0.5, %v637_v27  ;;  %646 = vtanh.f32 %v367_v26 }
 0x1db   :  { %v385_v31 = vadd.f32 0.5, %v377_v28  ;;  %648 = vtanh.f32 %v366_v29 }
 0x1dc   :  { %v639_v32 = vpop.eup %638  ;;  %v384_v33 = vadd.f32 0.5, %v376_v30 }
 0x1dd   :  { %v641_v34 = vpop.eup %640  ;;  %v379_v35 = vmul.f32 0.5, %v639_v32 }
 0x1de   :  { %v608_v36 = vpack.c.bf16 %v385_v31, %v384_v33  ;;  %v378_v37 = vmul.f32 0.5, %v641_v34 }
 0x1df   :  { %v387_v38 = vadd.f32 0.5, %v379_v35 }
 0x1e0   :  { %v643_v39 = vpop.eup %642  ;;  %v386_v40 = vadd.f32 0.5, %v378_v37  ;;  %609 = vmatpush3.bf16.msra.mxu0 %v608_v36 }
 0x1e1   :  { %v645_v41 = vpop.eup %644  ;;  %v381_v42 = vmul.f32 0.5, %v643_v39  ;;  %610 = vmatprep.subr.bf16.mxu0 %v679_v57 }
 0x1e2   :  { %v611_v43 = vpack.c.bf16 %v387_v38, %v386_v40  ;;  %v380_v44 = vmul.f32 0.5, %v645_v41 }
 0x1e3   :  { %v389_v45 = vadd.f32 0.5, %v381_v42 }
 0x1e4   :  { %v647_v46 = vpop.eup %646  ;;  %v388_v47 = vadd.f32 0.5, %v380_v44  ;;  %612 = vmatpush3.bf16.msra.mxu0 %v611_v43 }
 0x1e5   :  { %v649_v48 = vpop.eup %648  ;;  %v383_v49 = vmul.f32 0.5, %v647_v46  ;;  %613 = vmatprep.subr.bf16.mxu0 %v679_v57 }
 0x1e6   :  { %v614_v50 = vpack.c.bf16 %v389_v45, %v388_v47  ;;  %v382_v51 = vmul.f32 0.5, %v649_v48 }
 0x1e7   :  { %v391_v52 = vadd.f32 0.5, %v383_v49 }
 0x1e8   :  { %v390_v53 = vadd.f32 0.5, %v382_v51  ;;  %615 = vmatpush3.bf16.msra.mxu0 %v614_v50 }
 0x1e9   :  { %616 = vmatprep.subr.bf16.mxu0 %v679_v57 }
 0x1ea   :  { %v617_v54 = vpack.c.bf16 %v391_v52, %v390_v53 }
 0x1ec   :  { %618 = vmatpush3.bf16.msra.mxu0 %v617_v54 }
 0x1ef   :  { %597 = vmatmul.mubr.msk.f32.vlgmr.msra.gmra.mrb[4].mxu0 %vm399_vm4, %v392_v55 }
 0x2c2   :  { %v469_v58 = vpop.f32.mrb[4].mxu0 }
 0x2c3   :  { %v470_v59 = vadd.f32 %v469_v58, %v397_v56  ;;  %v598_v60 = vpop.f32.mrb[5].mxu0 }
 0x2c5   :  { %v474_v61 = vrot.slane %v470_v59, 1 }
 0x2c7   :  { %v477_v62 = vsub.f32 %v470_v59, %v474_v61  ;;  %v476_v11 = vmax.f32 %v470_v59, %v474_v61 }
 0x2c9   :  { %v478_v63 = vand.u32 2147483647, %v477_v62 }
 0x2cb   :  { %v479_v0 = vsub.f32 0.0, %v478_v63 }
 0x2cd   :  { %v480_v1 = vmul.f32 1.442695, %v479_v0 }
 0x2cf   :  { %650 = vpow2.f32 %v480_v1 }
 0x2d9   :  { %v651_v2 = vpop.eup %650 }
 0x2da   :  { %v482_v57 = vadd.f32 1.0, %v651_v2  ;;  %v485_v3 = vmul.f32 -0.5, %v651_v2  ;;  %v488_v6 = vand.u32 2147483647, %v651_v2 }
 0x2dc   :  { %652 = vlog2.f32 %v482_v57  ;;  %v486_v5 = vadd.f32 1.0, %v485_v3  ;;  %vm489_vm5 = vcmp.lt.f32.partialorder %v488_v6, 0.0004427343 }
 0x2de   :  { %v487_v10 = vmul.f32 %v651_v2, %v486_v5 }
 0x2e6   :  { %v653_v8 = vpop.eup %652 }
 0x2e7   :  { %v484_v9 = vmul.f32 0.6931472, %v653_v8 }
 0x2e9   :  { %v490_v13 = vsel %vm489_vm5, %v487_v10, %v484_v9 }
 0x2ea   :  { %v491_v14 = vadd.f32 %v490_v13, %v476_v11 }
 0x2ec   :  { %v495_v15 = vrot.slane %v491_v14, %v494_v12 }
 0x2ee   :  { %v496_v16 = vsub.f32 %v470_v59, %v495_v15 }
 0x2f0   :  { %497 = vst [vmem:[#allocation2] sm:$0x3] %v496_v16 }
 0x2f1   :  { %665 = shalt.err (!%p662_p4)
}
 0x2f2   :  { %s666_s27 = scalar_lea.hbm %s839_s7, 32 }
 0x2f3   :  { %p667_p5 = scmp.ne.s32.totalorder %s839_s7, %s666_s27  ;;  %p670_p6 = scmp.lt.u32.totalorder %s666_s27, %s839_s7 }
 0x2f5   :  { %p672_p7 = pnand %p670_p6, %p667_p5 }
 0x2f7   :  { %675 = shalt.err (!%p672_p7)
}
 0x2f8   :  { %507 = dma.vmem_to_hbm [thread:$0]  %s505_s23, 32, %s839_s7, [#allocation3]  }
 0x2f9   :  { %676 = dma.done.wait [#allocation3], 32  }
 0x2fa   :  { %677 = vsyncadd [#allocation3], 4294967264 }
 0x2fb   :  { %511 = vsyncpa [#allocation3], 1 }

</bundles_post_ra>
